<compile_context>
chip_gen: v5e
topology: v5e:2x2
jax: 0.10.0
libtpu: 0.0.40
codegen_flags: <defaults>
</compile_context>

<pallas_src>
import jax
import jax.numpy as jnp
from jax.experimental import pallas as pl
from jax.experimental.pallas import tpu as pltpu


def _copy_kernel(x_ref, o_ref):
    # Pure pass-through: the chomp lives entirely in the BlockSpecs.
    o_ref[...] = x_ref[...]


def _round_up(x: int, m: int) -> int:
    return ((x + m - 1) // m) * m


def chomp1d(x: jax.Array, chomp_size: int, *, tile_rows: int = 256,
            tile_lanes: int = 2048, use_pallas=None) -> jax.Array:
    """Pallas equivalent of Chomp1d.forward.  x: (N, C, L) -> (N, C, L - chomp)."""
    if chomp_size <= 0:
        return x

    n, c, l = x.shape
    l_out = l - chomp_size
    if l_out <= 0:
        # Match PyTorch: chomp_size >= L yields an empty tensor; no kernel needed.
        return x[:, :, :max(l_out, 0)]

    if use_pallas is None:
        # A tiny pure slice is better served by XLA directly (no extra VMEM
        # round trip / pallas_call launch overhead); ideally the chomp is fused
        # into the neighbouring TCN conv kernel's index_map instead.
        use_pallas = n * c * l_out >= (1 << 16)
    if not use_pallas:
        return x[:, :, :l_out]

    # Flatten (N, C) into one row axis — metadata-only for a contiguous array.
    rows = n * c
    xf = x.reshape(rows, l)

    # Sublane packing: 8 rows/vreg for 32-bit, 16 for 16-bit, 32 for 8-bit.
    sub = {1: 32, 2: 16, 4: 8}.get(jnp.dtype(x.dtype).itemsize, 8)
    tile_r = min(tile_rows, _round_up(rows, sub))
    tile_l = min(tile_lanes, _round_up(l_out, 128))

    grid = (pl.cdiv(rows, tile_r), pl.cdiv(l_out, tile_l))

    out = pl.pallas_call(
        _copy_kernel,
        out_shape=jax.ShapeDtypeStruct((rows, l_out), x.dtype),
        grid=grid,
        # Input blocks tile only the kept lanes [0, L_out); since the grid
        # extent is cdiv(L_out, tile_l), the chomped tail is never fetched
        # except (possibly) inside the one partial remainder tile, whose
        # out-of-range output columns are masked on store by Pallas.
        in_specs=[pl.BlockSpec((tile_r, tile_l), lambda i, j: (i, j))],
        out_specs=pl.BlockSpec((tile_r, tile_l), lambda i, j: (i, j)),
        compiler_params=pltpu.CompilerParams(
            dimension_semantics=("parallel", "parallel"),
        ),
    )(xf)

    return out.reshape(n, c, l_out)


if __name__ == "__main__":
    key = jax.random.PRNGKey(0)
    # Small shapes consistent with a TCN Chomp1d usage: (batch, channels, seq_len)
    batch, channels, seq_len = 2, 4, 16
    chomp_size = 3  # typical: (kernel_size - 1) * dilation

    x = jax.random.normal(key, (batch, channels, seq_len), dtype=jnp.float32)

    # Force the Pallas path even at this small demo size so the kernel is exercised.
    out = chomp1d(x, chomp_size, use_pallas=True)
    out = jax.block_until_ready(out)

    # Verify against the reference semantics: x[:, :, :-chomp_size]
    ref = x[:, :, :-chomp_size]
    assert out.shape == (batch, channels, seq_len - chomp_size)
    assert jnp.array_equal(out, ref)

    # Also sanity-check the edge cases handled without a kernel.
    assert jnp.array_equal(chomp1d(x, 0), x)
    assert chomp1d(x, seq_len).shape == (batch, channels, 0)

    print("KERNEL_OK")
</pallas_src>

<mosaic_0001>
module attributes {stable_mosaic.version = 11 : i64} {
  func.func @_copy_kernel(%arg0: i32, %arg1: i32, %arg2: memref<8x128xf32, #tpu.memory_space<vmem>>, %arg3: memref<8x128xf32, #tpu.memory_space<vmem>>) attributes {dimension_semantics = [#tpu.dimension_semantics<parallel>, #tpu.dimension_semantics<parallel>], iteration_bounds = array<i64: 1, 1>, scalar_prefetch = 0 : i64, scratch_operands = 0 : i64, tpu.core_type = #tpu.core_type<tc>, window_params = [{transform_indices = @transform_0, window_bounds = array<i64: 8, 128>}, {transform_indices = @transform_1, window_bounds = array<i64: 8, 128>}]} {
    %c0 = arith.constant 0 : index
    %c0_0 = arith.constant 0 : index
    %0 = vector.load %arg2[%c0, %c0_0] : memref<8x128xf32, #tpu.memory_space<vmem>>, vector<8x128xf32>
    %c0_1 = arith.constant 0 : index
    %c0_2 = arith.constant 0 : index
    %1 = vector.load %arg3[%c0_1, %c0_2] : memref<8x128xf32, #tpu.memory_space<vmem>>, vector<8x128xf32>
    tpu.vector_store %arg3[%c0_1, %c0_2], %0 {strides = array<i32>} : memref<8x128xf32, #tpu.memory_space<vmem>>, vector<8x128xf32>,
    return
  }
  func.func @transform_0(%arg0: i32, %arg1: i32) -> (i32, i32) {
    %c0_i32 = arith.constant 0 : i32
    return %arg0, %arg1 : i32, i32
  }
  func.func @transform_1(%arg0: i32, %arg1: i32) -> (i32, i32) {
    %c0_i32 = arith.constant 0 : i32
    return %arg0, %arg1 : i32, i32
  }
}

</mosaic_0001>

<bundles_post_ra>
// kernel: tpu_custom_call.1
= control target key start
LH: loop header
LB: loop body
LE: loop exit
PB: predicated region body
PF: predicated region fallthrough
CT: control target
= control target key end

     0   :  { %6 = vsyncpa [#allocation3], 0  ;;  %s114_s0 = inlined_call_operand.hbm [shape: f32[8,16], index: 0, kind: input, shape index: {}]   ;;  %s115_s1 = inlined_call_operand.hbm [shape: f32[8,13], index: 1, kind: output, shape index: {}]  }
   0x1   :  { %7 = vsyncpa [#allocation4], 0  ;;  %s13_s8 = sshll.u32 %s114_s0, 4  ;;  %s96_s9 = smov [#allocation2]   ;;  %s14_s8 = int_to_ptr.hbm [resolvable:$true] %s13_s8 }
   0x2   :  { %s15_s10 = sshll.u32 %s96_s9, 4  ;;  %s16_s10 = int_to_ptr.vmem [resolvable:$true] %s15_s10 }
   0x3   :  { %18 = dma.hbm_to_vmem [thread:$0]  %s14_s8, 128, %s16_s10, [#allocation3]  }
   0x4   :  { %92 = dma.done.wait [#allocation3], 128  }
   0x5   :  { %93 = vsyncadd [#allocation3], 4294967168  ;;  %s97_s11 = smov [#allocation5]   ;;  %s32_s15 = sshll.u32 %s115_s1, 4  ;;  %v23_v0 = vld [vmem:[#allocation2] sm:$0xff]  ;;  %s33_s15 = int_to_ptr.hbm [resolvable:$true] %s32_s15 }
   0x6   :  { %s30_s12 = sshll.u32 %s97_s11, 4  ;;  %24 = vst [vmem:[#allocation5] sm:$0xff] %v23_v0  ;;  %s31_s12 = int_to_ptr.vmem [resolvable:$true] %s30_s12 }
   0x7   :  { %35 = dma.vmem_to_hbm [thread:$0]  %s31_s12, 128, %s33_s15, [#allocation4]  }
   0x8   :  { %94 = dma.done.wait [#allocation4], 128  }
   0x9   :  { %95 = vsyncadd [#allocation4], 4294967168 }
   0xa   :  { %40 = vsyncpa [#allocation3], 1 }
   0xb   :  { %41 = vsyncpa [#allocation4], 1 }

</bundles_post_ra>
